<compile_context>
chip_gen: v6e
topology: v6e:2x2x1
jax: 0.10.0
libtpu: 0.0.40
codegen_flags: <defaults>
</compile_context>

<pallas_src>
import math

import jax
import jax.numpy as jnp
from jax.experimental import pallas as pl
from jax.experimental.pallas import tpu as pltpu


_LANE_CANDIDATES = (2048, 1024, 512, 256, 128)
_TARGET_BLOCK_BYTES = 4 * 1024 * 1024          # ~4 MiB per buffer
_NATIVE_STORE_DTYPES = (jnp.dtype(jnp.float32), jnp.dtype(jnp.bfloat16),
                        jnp.dtype(jnp.float16))


def _make_adc_kernel(scale: float, offset: float, max_q_val: float, out_dtype):
    def adc_kernel(x_ref, o_ref):
        x = x_ref[...].astype(jnp.float32)
        y = jnp.clip(x * scale + offset, 0.0, max_q_val)
        o_ref[...] = jnp.round(y).astype(out_dtype)

    return adc_kernel


def _adc_jnp(x_f32, scale, offset, max_q_val):
    # Plain-jnp fallback for the tiny (<128 elem) ragged tail.
    return jnp.round(jnp.clip(x_f32 * scale + offset, 0.0, max_q_val))


def _run_adc_slab(x2d, scale, offset, max_q_val, store_dtype):
    rows, lane_width = x2d.shape
    itemsize = jnp.dtype(store_dtype).itemsize

    # Row tile sized for ~4 MiB blocks (byte-based, dtype-aware).
    target_rows = max(8, (_TARGET_BLOCK_BYTES // itemsize) // lane_width)
    target_rows -= target_rows % 8                     # (8,128) constraint

    if rows <= target_rows:
        if rows >= 16:
            # Guarantee >=2 grid steps so both v7x TensorCores stream.
            half = (rows + 1) // 2
            row_tile = ((half + 7) // 8) * 8
            if row_tile >= rows:
                row_tile = rows
        else:
            row_tile = rows                            # full-dim block is legal
    else:
        row_tile = target_rows

    grid = (pl.cdiv(rows, row_tile),)

    block_bytes = row_tile * lane_width * itemsize
    # 2 buffers each for input + output, plus slack; raise v5e's 16 MiB default.
    vmem_limit = min(48 * 1024 * 1024,
                     max(16 * 1024 * 1024, 4 * block_bytes + 4 * 1024 * 1024))

    kernel = _make_adc_kernel(scale, offset, max_q_val, store_dtype)

    return pl.pallas_call(
        kernel,
        out_shape=jax.ShapeDtypeStruct((rows, lane_width), store_dtype),
        grid_spec=pltpu.PrefetchScalarGridSpec(
            num_scalar_prefetch=0,
            grid=grid,
            in_specs=[pl.BlockSpec((row_tile, lane_width), lambda i: (i, 0))],
            out_specs=pl.BlockSpec((row_tile, lane_width), lambda i: (i, 0)),
        ),
        compiler_params=pltpu.CompilerParams(
            dimension_semantics=("parallel",),
            vmem_limit_bytes=vmem_limit),
    )(x2d)


def adc_forward(x, quantization_bitwidth=8, voltage_min=0.0, voltage_max=255.0):
    """Applies ADC conversion elementwise. x: float array of any shape."""
    max_q_val = float(2 ** quantization_bitwidth - 1)
    vmin = float(voltage_min)
    vspan = float(voltage_max) - vmin
    # Fold the affine transform into compile-time (scale, offset).
    # vspan == 0 is degenerate (PyTorch would emit inf/nan); propagate NaN.
    scale = (max_q_val / vspan) if vspan != 0.0 else math.nan
    offset = -vmin * scale

    orig_shape = x.shape
    orig_dtype = x.dtype
    n = x.size
    if n == 0:
        return jnp.zeros(orig_shape, orig_dtype)

    # Keep sub-32-bit floats in their native dtype in HBM; widen in-kernel.
    store_dtype = (orig_dtype if jnp.dtype(orig_dtype) in _NATIVE_STORE_DTYPES
                   else jnp.dtype(jnp.float32))

    x_flat = jnp.reshape(x, (-1,))
    if x_flat.dtype != store_dtype:
        x_flat = x_flat.astype(store_dtype)

    # Widest lane width that divides n exactly -> unmasked stores, no pad copy.
    lane_width = None
    for w in _LANE_CANDIDATES:
        if n % w == 0:
            lane_width = w
            break

    if lane_width is not None:
        out_flat = _run_adc_slab(
            x_flat.reshape(n // lane_width, lane_width),
            scale, offset, max_q_val, store_dtype).reshape(-1)
    else:
        # Rare ragged case: kernel on the 128-divisible prefix, jnp on the
        # <=127-element tail (no full-array pad / slice passes).
        main = (n // 128) * 128
        tail = _adc_jnp(x_flat[main:].astype(jnp.float32),
                        scale, offset, max_q_val).astype(store_dtype)
        if main > 0:
            head = _run_adc_slab(
                x_flat[:main].reshape(main // 128, 128),
                scale, offset, max_q_val, store_dtype).reshape(-1)
            out_flat = jnp.concatenate([head, tail])
        else:
            out_flat = tail

    out = out_flat.reshape(orig_shape)
    if out.dtype != orig_dtype:
        out = out.astype(orig_dtype)
    return out


if __name__ == "__main__":
    key0, key1 = jax.random.split(jax.random.PRNGKey(0), 2)
    max_q = float(2 ** 8 - 1)

    # Analog voltages; include values outside [voltage_min, voltage_max] to
    # exercise the clamp.
    x = jax.random.uniform(key0, (2, 4, 16, 16), jnp.float32,
                           minval=-40.0, maxval=300.0)
    y = adc_forward(x, quantization_bitwidth=8, voltage_min=0.0,
                    voltage_max=255.0)
    y = jax.block_until_ready(y)

    # Reference mirrors PyTorch ADC.forward (divide -> clamp -> mul -> round).
    ref = jnp.round(jnp.clip((x - 0.0) / (255.0 - 0.0), 0.0, 1.0) * max_q)
    assert y.shape == x.shape and y.dtype == x.dtype
    diff = jnp.abs(y - ref)
    # Folded scale/offset may flip a value by 1 LSB only at exact .5
    # round-half-to-even boundaries; allow at most that.
    assert float(jnp.max(diff)) <= 1.0 and float(jnp.mean(diff)) < 1e-2

    # Ragged-size path (n = 150, not a multiple of 128): kernel prefix + tail.
    x2 = jax.random.uniform(key1, (3, 50), jnp.float32,
                            minval=-10.0, maxval=260.0)
    y2 = jax.block_until_ready(adc_forward(x2))
    ref2 = jnp.round(jnp.clip(x2 / 255.0, 0.0, 1.0) * max_q)
    diff2 = jnp.abs(y2 - ref2)
    assert y2.shape == x2.shape and y2.dtype == x2.dtype
    assert float(jnp.max(diff2)) <= 1.0 and float(jnp.mean(diff2)) < 1e-2

    print("KERNEL_OK")
</pallas_src>

<mosaic_0001>
module attributes {stable_mosaic.version = 11 : i64} {
  func.func @adc_kernel(%arg0: i32, %arg1: memref<1x2048xf32, #tpu.memory_space<vmem>>, %arg2: memref<1x2048xf32, #tpu.memory_space<vmem>>) attributes {dimension_semantics = [#tpu.dimension_semantics<parallel>], iteration_bounds = array<i64: 1>, scalar_prefetch = 0 : i64, scratch_operands = 0 : i64, tpu.core_type = #tpu.core_type<tc>, window_params = [{transform_indices = @transform_0, window_bounds = array<i64: 1, 2048>}, {transform_indices = @transform_1, window_bounds = array<i64: 1, 2048>}]} {
    %c0 = arith.constant 0 : index
    %c0_0 = arith.constant 0 : index
    %0 = vector.load %arg1[%c0, %c0_0] : memref<1x2048xf32, #tpu.memory_space<vmem>>, vector<1x2048xf32>
    %cst = arith.constant 1.000000e+00 : f32
    %1 = vector.broadcast %cst : f32 to vector<1x2048xf32>
    %2 = arith.mulf %0, %1 : vector<1x2048xf32>
    %cst_1 = arith.constant -0.000000e+00 : f32
    %3 = vector.broadcast %cst_1 : f32 to vector<1x2048xf32>
    %4 = arith.addf %2, %3 : vector<1x2048xf32>
    %cst_2 = arith.constant 0.000000e+00 : f32
    %cst_3 = arith.constant 2.550000e+02 : f32
    %5 = vector.broadcast %cst_2 : f32 to vector<1x2048xf32>
    %6 = arith.maximumf %5, %4 : vector<1x2048xf32>
    %7 = vector.broadcast %cst_3 : f32 to vector<1x2048xf32>
    %8 = arith.minimumf %7, %6 : vector<1x2048xf32>
    %9 = math.roundeven %8 : vector<1x2048xf32>
    %c0_4 = arith.constant 0 : index
    %c0_5 = arith.constant 0 : index
    %10 = vector.load %arg2[%c0_4, %c0_5] : memref<1x2048xf32, #tpu.memory_space<vmem>>, vector<1x2048xf32>
    tpu.vector_store %arg2[%c0_4, %c0_5], %9 {strides = array<i32>} : memref<1x2048xf32, #tpu.memory_space<vmem>>, vector<1x2048xf32>,
    return
  }
  func.func @transform_0(%arg0: i32) -> (i32, i32) {
    %c0_i32 = arith.constant 0 : i32
    %c0_i32_0 = arith.constant 0 : i32
    return %arg0, %c0_i32 : i32, i32
  }
  func.func @transform_1(%arg0: i32) -> (i32, i32) {
    %c0_i32 = arith.constant 0 : i32
    %c0_i32_0 = arith.constant 0 : i32
    return %arg0, %c0_i32 : i32, i32
  }
}

</mosaic_0001>

<bundles_post_ra>
// kernel: tpu_custom_call.1
= control target key start
LH: loop header
LB: loop body
LE: loop exit
PB: predicated region body
PF: predicated region fallthrough
CT: control target
= control target key end

     0   :  { %6 = vsyncpa [#allocation3], 0  ;;  %s126_s0 = inlined_call_operand.hbm [shape: f32[1,2048], index: 0, kind: input, shape index: {}]   ;;  %s127_s1 = inlined_call_operand.hbm [shape: f32[1,2048], index: 1, kind: output, shape index: {}]  }
   0x1   :  { %7 = vsyncpa [#allocation4], 0  ;;  %s108_s6 = smov [#allocation2]  }
   0x2   :  { %s14_s7 = sshll.u32 %s108_s6, 4  ;;  %s15_s7 = int_to_ptr.vmem [resolvable:$true] %s14_s7 }
   0x3   :  { %s72_s8 = scalar_lea.vmem %s15_s7, 256  ;;  %p77_p1 = scmp.lt.s32.totalorder %s15_s7, %s15_s7 }
   0x4   :  { %p73_p0 = scmp.ne.s32.totalorder %s15_s7, %s72_s8  ;;  %p78_p2 = scmp.lt.s32.totalorder %s72_s8, %s72_s8 }
   0x6   :  { %p79_p3 = por %p78_p2, %p77_p1 }
   0x8   :  { %p80_p4 = pnand %p79_p3, %p73_p0 }
   0xa   :  { %83 = shalt.err (!%p80_p4)
}
   0xb   :  { %17 = dma.hbm_to_vmem [thread:$0]  %s126_s0, 256, %s15_s7, [#allocation3]  }
   0xc   :  { %104 = dma.done.wait [#allocation3], 256  }
   0xd   :  { %105 = vsyncadd [#allocation3], 4294967040  ;;  %v21_v0 = vld [vmem:[#allocation2] sm:$0xff]  ;;  %v22_v1 = vld [vmem:[#allocation2 + $0x8] sm:$0xff]  ;;  %s109_s0 = smov [#allocation5]  }
   0xe   :  { %v23_v2 = vmax.f32 %v21_v0, 0.0  ;;  %v24_v3 = vmax.f32 %v22_v1, 0.0  ;;  %s37_s11 = sshll.u32 %s109_s0, 4  ;;  %s38_s11 = int_to_ptr.vmem [resolvable:$true] %s37_s11 }
   0xf   :  { %s84_s12 = scalar_lea.vmem %s38_s11, 256  ;;  %p89_p6 = scmp.lt.s32.totalorder %s38_s11, %s38_s11 }
  0x10   :  { %v25_v4 = vmin.f32 %v23_v2, 255.0  ;;  %v26_v5 = vmin.f32 %v24_v3, 255.0  ;;  %p85_p5 = scmp.ne.s32.totalorder %s38_s11, %s84_s12  ;;  %p90_p7 = scmp.lt.s32.totalorder %s84_s12, %s84_s12 }
  0x12   :  { %v48_v6 = vcvt.f32.s32 %v25_v4  ;;  %v46_v7 = vand.u32 2147483647, %v25_v4  ;;  %v56_v8 = vcvt.f32.s32 %v26_v5  ;;  %v51_v10 = vand.u32 2147483648, %v25_v4  ;;  %p91_p8 = por %p90_p7, %p89_p6 }
  0x13   :  { %v54_v11 = vand.u32 2147483647, %v26_v5  ;;  %v59_v13 = vand.u32 2147483648, %v26_v5 }
  0x14   :  { %v49_v9 = vcvt.s32.f32 %v48_v6  ;;  %v57_v12 = vcvt.s32.f32 %v56_v8  ;;  %vm47_vm0 = vcmp.lt.f32.partialorder %v46_v7, 8388608.0  ;;  %p92_p9 = pnand %p91_p8, %p85_p5 }
  0x15   :  { %vm55_vm1 = vcmp.lt.f32.partialorder %v54_v11, 8388608.0 }
  0x16   :  { %v50_v14 = vand.u32 2147483647, %v49_v9  ;;  %v58_v15 = vand.u32 2147483647, %v57_v12 }
  0x18   :  { %v52_v16 = vor.u32 %v51_v10, %v50_v14  ;;  %v60_v17 = vor.u32 %v59_v13, %v58_v15 }
  0x1a   :  { %v53_v18 = vsel %vm47_vm0, %v52_v16, %v25_v4  ;;  %v61_v19 = vsel %vm55_vm1, %v60_v17, %v26_v5 }
  0x1b   :  { %29 = vst [vmem:[#allocation5] sm:$0xff] %v53_v18  ;;  %30 = vst [vmem:[#allocation5 + $0x8] sm:$0xff] %v61_v19 }
  0x1c   :  { %95 = shalt.err (!%p92_p9)
}
  0x1d   :  { %40 = dma.vmem_to_hbm [thread:$0]  %s38_s11, 256, %s127_s1, [#allocation4]  }
  0x1e   :  { %106 = dma.done.wait [#allocation4], 256  }
  0x1f   :  { %107 = vsyncadd [#allocation4], 4294967040 }
  0x20   :  { %44 = vsyncpa [#allocation3], 1 }
  0x21   :  { %45 = vsyncpa [#allocation4], 1 }

</bundles_post_ra>
